<compile_context>
chip_gen: v5e
topology: v5e:2x2
jax: 0.10.0
libtpu: 0.0.40
codegen_flags: <defaults>
</compile_context>

<pallas_src>
import jax
import jax.numpy as jnp
from jax.experimental import pallas as pl
from jax.experimental.pallas import tpu as pltpu


def _round_up(x, m):
    return ((x + m - 1) // m) * m


def _padded_batch(b):
    return _round_up(b, 8) if b <= 128 else _round_up(b, 128)


def _pick_batch_tile(bp):
    """Largest 8-aligned divisor of bp that is <= 256 and leaves >= 2 tiles."""
    if bp <= 8:
        return bp
    start = (min(bp // 2, 256) // 8) * 8
    for bt in range(start, 7, -8):
        if bp % bt == 0:
            return bt
    return 8


def _pick_time_chunk(t):
    """Chunk length <= 8 minimizing time padding (prefer larger chunks)."""
    best_c, best_waste = 1, t
    for c in range(min(t, 8), 0, -1):
        waste = (-t) % c
        if waste < best_waste:
            best_c, best_waste = c, waste
            if waste == 0:
                break
    return best_c


# ----------------------------------------------------------------------------
# Shared matmul + bias kernel:  (M, K) @ (K, Np) + (1, Np) -> (M, Np).
# Used for the hoisted LSTM input projection (bf16 out) and the vocab
# projection (f32 out).  Columns are the OUTER grid axis so the (K, tn) weight
# tile is fetched from HBM only once per column tile; the much smaller x tile
# is the one that revolves.
# ----------------------------------------------------------------------------
def _matmul_bias_kernel(x_ref, w_ref, b_ref, o_ref):
    acc = jnp.dot(x_ref[...], w_ref[...],
                  preferred_element_type=jnp.float32) + b_ref[...]
    o_ref[...] = acc.astype(o_ref.dtype)


def matmul_bias(x, w_t, b, out_dtype=jnp.float32):
    """x: (M, K); w_t: (K, Np) bf16 with Np % 128 == 0; b: (1, Np) f32."""
    M, K = x.shape
    Np = w_t.shape[1]
    if x.dtype != jnp.bfloat16:          # callers already pass bf16 (no-op then)
        x = x.astype(jnp.bfloat16)

    # Row tiling: small padding waste (<= 7 rows resident, <= 127 when tiled).
    Mp = _round_up(M, 8)
    if Mp <= 512:
        tm = Mp
    else:
        Mp = _round_up(M, 128)
        tm = 128
    if Mp != M:
        x = jnp.pad(x, ((0, Mp - M), (0, 0)))

    # Column tiling: big lane-dense tiles (weight block easily fits VMEM).
    if Np <= 2048:
        tn = Np
    else:
        tn = 128
        for c in (2048, 1024, 512, 256):
            if Np % c == 0:
                tn = c
                break

    out_itemsize = jnp.dtype(out_dtype).itemsize
    need = (2 * tm * K * 2               # x blocks (bf16, double-buffered)
            + 2 * K * tn * 2             # weight blocks (bf16)
            + 2 * 8 * tn * 4             # bias blocks (f32, sublane-padded)
            + 2 * tm * tn * out_itemsize)

    # TODO(synk): for very large K the contraction should get its own
    # ("arbitrary") grid axis with a VMEM accumulator; K here is <= Hp.
    out = pl.pallas_call(
        _matmul_bias_kernel,
        out_shape=jax.ShapeDtypeStruct((Mp, Np), out_dtype),
        grid_spec=pltpu.PrefetchScalarGridSpec(
            num_scalar_prefetch=0,
            grid=(Np // tn, Mp // tm),   # columns outer, rows inner
            in_specs=[
                pl.BlockSpec((tm, K), lambda j, i: (i, 0)),
                pl.BlockSpec((K, tn), lambda j, i: (0, j)),
                pl.BlockSpec((1, tn), lambda j, i: (0, j)),
            ],
            out_specs=pl.BlockSpec((tm, tn), lambda j, i: (i, j)),
        ),
        compiler_params=pltpu.CompilerParams(
            dimension_semantics=("parallel", "parallel"),
            vmem_limit_bytes=int(need) + (8 << 20)),
    )(x, w_t, b)
    return out[:M]


# ----------------------------------------------------------------------------
# LSTM recurrence kernel.  Input gates_x = x @ W_ih + (b_ih + b_hh) is
# precomputed for ALL time steps (bf16); only h @ W_hh runs inside the time
# loop.  Grid = (batch tiles "parallel", time chunks "arbitrary" innermost);
# h (bf16) / c (f32) are carried in VMEM scratch across time chunks.
# Gate order (PyTorch): i, f, g, o; each gate occupies a 128-aligned Hp chunk.
# ----------------------------------------------------------------------------
def _lstm_recurrence_kernel(gx_ref, whh_ref, h_out_ref, h_bf_sc, c_sc):
    t_chunk = gx_ref.shape[0]
    Hp = c_sc.shape[-1]

    @pl.when(pl.program_id(1) == 0)
    def _():
        h_bf_sc[...] = jnp.zeros_like(h_bf_sc)
        c_sc[...] = jnp.zeros_like(c_sc)

    def step(t, carry):
        gates = (gx_ref[t].astype(jnp.float32)
                 + jnp.dot(h_bf_sc[...], whh_ref[...],
                           preferred_element_type=jnp.float32))
        i_g = jax.nn.sigmoid(gates[:, 0 * Hp:1 * Hp])
        f_g = jax.nn.sigmoid(gates[:, 1 * Hp:2 * Hp])
        g_g = jnp.tanh(gates[:, 2 * Hp:3 * Hp])
        o_g = jax.nn.sigmoid(gates[:, 3 * Hp:4 * Hp])

        c_new = f_g * c_sc[...] + i_g * g_g
        h_new = (o_g * jnp.tanh(c_new)).astype(jnp.bfloat16)

        c_sc[...] = c_new
        h_bf_sc[...] = h_new          # bf16 MXU operand for the next step
        h_out_ref[t] = h_new          # lane-dense bf16 store
        return carry

    jax.lax.fori_loop(0, t_chunk, step, 0)


def lstm_recurrence(gates_x, w_hh_t, hidden_pad, batch_tile, t_chunk):
    """gates_x: (Tp, Bp, 4*Hp) bf16; w_hh_t: (Hp, 4*Hp) bf16 -> (Tp, Bp, Hp) bf16."""
    Tp, Bp, G = gates_x.shape
    n_bt = Bp // batch_tile
    n_tc = Tp // t_chunk

    need = (2 * t_chunk * batch_tile * G * 2              # gx blocks (bf16)
            + 2 * t_chunk * batch_tile * hidden_pad * 2   # h_out blocks (bf16)
            + 2 * hidden_pad * G * 2                      # w_hh (bf16)
            + batch_tile * hidden_pad * (4 + 2))          # c (f32) + h (bf16)

    return pl.pallas_call(
        _lstm_recurrence_kernel,
        out_shape=jax.ShapeDtypeStruct((Tp, Bp, hidden_pad), jnp.bfloat16),
        grid_spec=pltpu.PrefetchScalarGridSpec(
            num_scalar_prefetch=0,
            grid=(n_bt, n_tc),                            # time chunks innermost
            in_specs=[
                pl.BlockSpec((t_chunk, batch_tile, G), lambda bt, tc: (tc, bt, 0)),
                pl.BlockSpec((hidden_pad, G), lambda bt, tc: (0, 0)),
            ],
            out_specs=pl.BlockSpec((t_chunk, batch_tile, hidden_pad),
                                   lambda bt, tc: (tc, bt, 0)),
            scratch_shapes=[
                pltpu.VMEM((batch_tile, hidden_pad), jnp.bfloat16),  # h carry
                pltpu.VMEM((batch_tile, hidden_pad), jnp.float32),   # c carry
            ],
        ),
        compiler_params=pltpu.CompilerParams(
            dimension_semantics=("parallel", "arbitrary"),
            vmem_limit_bytes=int(need) + (8 << 20)),
    )(gates_x, w_hh_t)


# ----------------------------------------------------------------------------
# Weight packing helpers: pad each gate's H columns to Hp (128-aligned) and
# pad the input dimension; store transposed (in, 4*Hp), padding = zeros.
# ----------------------------------------------------------------------------
def _pack_gates_t(w, in_pad, H, Hp):
    """w: PyTorch-layout (4H, in_raw) -> (in_pad, 4*Hp) with zero padding."""
    in_raw = w.shape[1]
    out = jnp.zeros((in_pad, 4 * Hp), jnp.float32)
    for g in range(4):
        out = out.at[:in_raw, g * Hp:g * Hp + H].set(w[g * H:(g + 1) * H, :].T)
    return out


def _pack_gates_bias(b, H, Hp):
    out = jnp.zeros((1, 4 * Hp), jnp.float32)
    for g in range(4):
        out = out.at[0, g * Hp:g * Hp + H].set(b[g * H:(g + 1) * H])
    return out


# ----------------------------------------------------------------------------
# DecoderRNN: parameters + forward
# ----------------------------------------------------------------------------
class DecoderRNNPallas:
    def __init__(self, embed_size, hidden_size, vocab_size, num_layers, key):
        self.embed_size = embed_size
        self.hidden_size = hidden_size
        self.vocab_size = vocab_size
        self.num_layers = num_layers
        self.Hp = _round_up(hidden_size, 128)       # lane-dense hidden
        self.Vp = _round_up(vocab_size, 128)        # lane-dense vocab

        def u(k, shape, scale=0.1):
            return jax.random.uniform(k, shape, jnp.float32, -scale, scale)

        keys = jax.random.split(key, 1 + 4 * num_layers + 1)
        ki = iter(keys)

        # nn.Embedding(vocab_size, embed_size) -- stored bf16 (MXU input dtype).
        self.embed_weight = u(next(ki), (vocab_size, embed_size)).astype(jnp.bfloat16)

        # nn.LSTM(embed_size, hidden_size, num_layers); gate order i,f,g,o.
        H, Hp = hidden_size, self.Hp
        self.w_ih_t, self.w_hh_t, self.b = [], [], []
        for layer in range(num_layers):
            in_raw = embed_size if layer == 0 else hidden_size
            in_pad = embed_size if layer == 0 else Hp
            w_ih = u(next(ki), (4 * H, in_raw))
            w_hh = u(next(ki), (4 * H, H))
            b_ih = u(next(ki), (4 * H,))
            b_hh = u(next(ki), (4 * H,))
            self.w_ih_t.append(
                _pack_gates_t(w_ih, in_pad, H, Hp).astype(jnp.bfloat16))
            self.w_hh_t.append(
                _pack_gates_t(w_hh, Hp, H, Hp).astype(jnp.bfloat16))
            self.b.append(_pack_gates_bias(b_ih + b_hh, H, Hp))   # fused bias, f32

        # nn.Linear(hidden_size, vocab_size): stored transposed + padded, bf16.
        lin_w = u(next(ki), (vocab_size, hidden_size))
        lw = jnp.zeros((Hp, self.Vp), jnp.float32)
        lw = lw.at[:hidden_size, :vocab_size].set(lin_w.T)
        self.lin_w_t = lw.astype(jnp.bfloat16)
        self.lin_b = jnp.zeros((1, self.Vp), jnp.float32)

    def forward(self, features, captions, lengths):
        """features: (B, E) f32; captions: (B, T) int32;
        lengths: python list of ints, sorted descending, each <= T + 1.
        Returns packed logits (sum(lengths), vocab_size)."""
        B, T = captions.shape
        T_total = T + 1
        Hp = self.Hp

        # Embedding lookup (bf16 table) + prepend image feature (glue).
        emb = jnp.take(self.embed_weight, captions, axis=0)            # (B, T, E)
        feats = features.astype(jnp.bfloat16)
        embeddings = jnp.concatenate([feats[:, None, :], emb], 1)      # (B, T+1, E)
        x = jnp.transpose(embeddings, (1, 0, 2))                       # (T+1, B, E)

        # Pad batch (sublane) and time (chunk multiple) with zeros.  Padded
        # rows / steps are never gathered, and zero weight/bias padding keeps
        # padded hidden lanes exactly 0 throughout the recurrence.
        Bp = _padded_batch(B)
        if Bp != B:
            x = jnp.pad(x, ((0, 0), (0, Bp - B), (0, 0)))
        t_chunk = _pick_time_chunk(T_total)
        Tp = _round_up(T_total, t_chunk)
        if Tp != T_total:
            x = jnp.pad(x, ((0, Tp - T_total), (0, 0), (0, 0)))
        batch_tile = _pick_batch_tile(Bp)

        # Multi-layer LSTM.
        for layer in range(self.num_layers):
            in_dim = x.shape[-1]
            # Hoisted input projection (+ fused bias) as one big MXU matmul,
            # emitted in bf16 to halve the gate-slab HBM round trip.
            gx = matmul_bias(x.reshape(Tp * Bp, in_dim),
                             self.w_ih_t[layer], self.b[layer],
                             out_dtype=jnp.bfloat16)
            gx = gx.reshape(Tp, Bp, 4 * Hp)
            # Time-chunked recurrence: only h @ W_hh inside the time loop.
            x = lstm_recurrence(gx, self.w_hh_t[layer], Hp, batch_tile, t_chunk)

        # pack_padded_sequence order: time-major over valid (t, b) positions.
        idx_t, idx_b = [], []
        for t in range(T_total):
            for bi in range(B):
                if lengths[bi] > t:
                    idx_t.append(t)
                    idx_b.append(bi)
        packed = x[jnp.array(idx_t), jnp.array(idx_b)]                 # (N, Hp) bf16

        logits = matmul_bias(packed, self.lin_w_t, self.lin_b,
                             out_dtype=jnp.float32)                    # (N, Vp)
        return logits[:, :self.vocab_size]


# ----------------------------------------------------------------------------
# Pure-JAX reference with identical numerics (bf16 MXU inputs & intermediates,
# f32 accumulation, f32 c-state and gate math) to validate the Pallas kernels.
# ----------------------------------------------------------------------------
def reference_forward(model, features, captions, lengths):
    B, T = captions.shape
    Hp = model.Hp

    emb = jnp.take(model.embed_weight, captions, axis=0)
    feats = features.astype(jnp.bfloat16)
    x = jnp.transpose(jnp.concatenate([feats[:, None, :], emb], 1), (1, 0, 2))

    for layer in range(model.num_layers):
        w_ih_t = model.w_ih_t[layer]
        w_hh_t = model.w_hh_t[layer]
        b = model.b[layer]
        Tt, Bb, in_dim = x.shape
        gx = (jnp.dot(x.reshape(Tt * Bb, in_dim), w_ih_t,
                      preferred_element_type=jnp.float32) + b)
        gx = gx.astype(jnp.bfloat16).reshape(Tt, Bb, 4 * Hp)

        def step(carry, g_t):
            h, c = carry
            gates = g_t.astype(jnp.float32) + jnp.dot(
                h, w_hh_t, preferred_element_type=jnp.float32)
            i_g = jax.nn.sigmoid(gates[:, 0 * Hp:1 * Hp])
            f_g = jax.nn.sigmoid(gates[:, 1 * Hp:2 * Hp])
            g_g = jnp.tanh(gates[:, 2 * Hp:3 * Hp])
            o_g = jax.nn.sigmoid(gates[:, 3 * Hp:4 * Hp])
            c_n = f_g * c + i_g * g_g
            h_n = (o_g * jnp.tanh(c_n)).astype(jnp.bfloat16)
            return (h_n, c_n), h_n

        init = (jnp.zeros((Bb, Hp), jnp.bfloat16),
                jnp.zeros((Bb, Hp), jnp.float32))
        _, x = jax.lax.scan(step, init, gx)

    T_total = x.shape[0]
    idx_t, idx_b = [], []
    for t in range(T_total):
        for bi in range(B):
            if lengths[bi] > t:
                idx_t.append(t)
                idx_b.append(bi)
    packed = x[jnp.array(idx_t), jnp.array(idx_b)]
    logits = (jnp.dot(packed, model.lin_w_t,
                      preferred_element_type=jnp.float32) + model.lin_b)
    return logits[:, :model.vocab_size]


if __name__ == "__main__":
    embed_size = 32
    hidden_size = 32
    vocab_size = 40
    num_layers = 2
    B, T = 4, 8
    lengths = [9, 7, 5, 3]  # sorted descending, each <= T + 1

    key = jax.random.PRNGKey(0)
    k_params, k_feat, k_cap = jax.random.split(key, 3)

    model = DecoderRNNPallas(embed_size, hidden_size, vocab_size, num_layers,
                             k_params)

    features = jax.random.normal(k_feat, (B, embed_size), jnp.float32)
    captions = jax.random.randint(k_cap, (B, T), 0, vocab_size, jnp.int32)

    out = jax.block_until_ready(model.forward(features, captions, lengths))
    ref = jax.block_until_ready(
        reference_forward(model, features, captions, lengths))

    assert out.shape == (sum(lengths), vocab_size), out.shape
    max_err = float(jnp.max(jnp.abs(out - ref)))
    # bf16 intermediates: allow small elementwise-transcendental divergence.
    assert jnp.allclose(out, ref, atol=1e-2, rtol=1e-2), max_err

    print("KERNEL_OK")
</pallas_src>

<mosaic_0001>
module attributes {stable_mosaic.version = 11 : i64} {
  func.func @_matmul_bias_kernel(%arg0: i32, %arg1: i32, %arg2: memref<72x32xbf16, #tpu.memory_space<vmem>>, %arg3: memref<32x512xbf16, #tpu.memory_space<vmem>>, %arg4: memref<1x512xf32, #tpu.memory_space<vmem>>, %arg5: memref<72x512xbf16, #tpu.memory_space<vmem>>) attributes {dimension_semantics = [#tpu.dimension_semantics<parallel>, #tpu.dimension_semantics<parallel>], iteration_bounds = array<i64: 1, 1>, scalar_prefetch = 0 : i64, scratch_operands = 0 : i64, tpu.core_type = #tpu.core_type<tc>, window_params = [{transform_indices = @transform_0, window_bounds = array<i64: 72, 32>}, {transform_indices = @transform_1, window_bounds = array<i64: 32, 512>}, {transform_indices = @transform_2, window_bounds = array<i64: 1, 512>}, {transform_indices = @transform_3, window_bounds = array<i64: 72, 512>}]} {
    %c0 = arith.constant 0 : index
    %c0_0 = arith.constant 0 : index
    %0 = vector.load %arg2[%c0, %c0_0] : memref<72x32xbf16, #tpu.memory_space<vmem>>, vector<72x32xbf16>
    %c0_1 = arith.constant 0 : index
    %c0_2 = arith.constant 0 : index
    %1 = vector.load %arg3[%c0_1, %c0_2] : memref<32x512xbf16, #tpu.memory_space<vmem>>, vector<32x512xbf16>
    %cst = arith.constant dense<0.000000e+00> : vector<72x512xf32>
    %2 = tpu.matmul %0, %1, %cst {dimension_numbers = #tpu.dot_dimension_numbers<[1], [0], [0], [1], [0, 0, 1, 1], [], []>} : vector<72x32xbf16>, vector<32x512xbf16>, vector<72x512xf32> -> vector<72x512xf32>
    %c0_3 = arith.constant 0 : index
    %c0_4 = arith.constant 0 : index
    %3 = vector.load %arg4[%c0_3, %c0_4] : memref<1x512xf32, #tpu.memory_space<vmem>>, vector<1x512xf32>
    %4 = vector.broadcast %3 : vector<1x512xf32> to vector<72x512xf32>
    %5 = arith.addf %2, %4 : vector<72x512xf32>
    %6 = arith.truncf %5 : vector<72x512xf32> to vector<72x512xbf16>
    %c0_5 = arith.constant 0 : index
    %c0_6 = arith.constant 0 : index
    %7 = vector.load %arg5[%c0_5, %c0_6] : memref<72x512xbf16, #tpu.memory_space<vmem>>, vector<72x512xbf16>
    tpu.vector_store %arg5[%c0_5, %c0_6], %6 {strides = array<i32>} : memref<72x512xbf16, #tpu.memory_space<vmem>>, vector<72x512xbf16>,
    return
  }
  func.func @transform_0(%arg0: i32, %arg1: i32) -> (i32, i32) {
    %c0_i32 = arith.constant 0 : i32
    %c0_i32_0 = arith.constant 0 : i32
    return %arg1, %c0_i32 : i32, i32
  }
  func.func @transform_1(%arg0: i32, %arg1: i32) -> (i32, i32) {
    %c0_i32 = arith.constant 0 : i32
    %c0_i32_0 = arith.constant 0 : i32
    return %c0_i32, %arg0 : i32, i32
  }
  func.func @transform_2(%arg0: i32, %arg1: i32) -> (i32, i32) {
    %c0_i32 = arith.constant 0 : i32
    %c0_i32_0 = arith.constant 0 : i32
    return %c0_i32, %arg0 : i32, i32
  }
  func.func @transform_3(%arg0: i32, %arg1: i32) -> (i32, i32) {
    %c0_i32 = arith.constant 0 : i32
    return %arg1, %arg0 : i32, i32
  }
}

</mosaic_0001>

<bundles_post_ra>
// kernel: tpu_custom_call.1
= control target key start
LH: loop header
LB: loop body
LE: loop exit
PB: predicated region body
PF: predicated region fallthrough
CT: control target
= control target key end

     0   :  { %8 = vsyncpa [#allocation3], 0  ;;  %s579_s0 = inlined_call_operand.vmem [shape: bf16[72,32], index: 0, kind: input, shape index: {}]   ;;  %s580_s1 = inlined_call_operand.hbm [shape: bf16[32,512], index: 1, kind: input, shape index: {}]   ;;  %s581_s2 = inlined_call_operand.vmem [shape: f32[1,512], index: 2, kind: input, shape index: {}]   ;;  %s582_s3 = inlined_call_operand.hbm [shape: bf16[72,512], index: 3, kind: output, shape index: {}]  }
   0x1   :  { %9 = vsyncpa [#allocation4], 0  ;;  %s16_s14 = sshll.u32 %s580_s1, 4  ;;  %s461_s15 = smov [#allocation2]   ;;  %s17_s14 = int_to_ptr.hbm [resolvable:$true] %s16_s14 }
   0x2   :  { %s18_s16 = sshll.u32 %s461_s15, 4  ;;  %s462_s17 = smov 256   ;;  %s19_s16 = int_to_ptr.vmem [resolvable:$true] %s18_s16 }
   0x3   :  { %s463_s18 = smov 16  }
   0x4   :  { %24 = dma.hbm_to_vmem [thread:$0]  %s17_s14, 1024, %s19_s16, [#allocation3], %s462_s17, %s462_s17, %s463_s18  }
   0x5   :  { %457 = dma.done.wait [#allocation3], 1024  }
   0x6   :  { %458 = vsyncadd [#allocation3], 4294966272  ;;  %v359_v0 = vld [vmem:[#allocation2 + $0x20] sm:$0xf]  ;;  %v403_v1 = vld [vmem:[#allocation2 + $0x2c] sm:$0xf0] }
   0x7   :  { %v401_v2 = vld [vmem:[#allocation2 + $0x24] sm:$0xf]  ;;  %v360_v3 = vor.u32 %v403_v1, %v359_v0  ;;  %v361_v4 = vld [vmem:[#allocation2 + $0x30] sm:$0xf0]  ;;  %v367_v5 = vld [vmem:[#allocation2 + $0x28] sm:$0xf] }
   0x8   :  { %v404_v6 = vld [vmem:[#allocation2 + $0x34] sm:$0xf0]  ;;  %v364_v7 = vor.u32 %v401_v2, %v361_v4  ;;  %v402_v9 = vld [vmem:[#allocation2 + $0x2c] sm:$0xf]  ;;  %v369_v10 = vld [vmem:[#allocation2 + $0x38] sm:$0xf0] }
   0x9   :  { %v368_v8 = vor.u32 %v404_v6, %v367_v5  ;;  %v343_v11 = vld [vmem:[#allocation2] sm:$0xf]  ;;  %144 = vmatpush.bf16.msra.mxu0 %v360_v3  ;;  %v372_v12 = vor.u32 %v402_v9, %v369_v10  ;;  %v399_v13 = vld [vmem:[#allocation2 + $0xc] sm:$0xf0]  ;;  %v397_v14 = vld [vmem:[#allocation2 + $0x4] sm:$0xf] }
   0xa   :  { %v345_v15 = vld [vmem:[#allocation2 + $0x10] sm:$0xf0]  ;;  %177 = vmatpush.bf16.msra.mxu1 %v364_v7  ;;  %v344_v16 = vor.u32 %v399_v13, %v343_v11  ;;  %v351_v18 = vld [vmem:[#allocation2 + $0x8] sm:$0xf]  ;;  %v400_v19 = vld [vmem:[#allocation2 + $0x14] sm:$0xf0] }
   0xb   :  { %210 = vmatpush.bf16.msra.mxu2 %v368_v8  ;;  %v348_v17 = vor.u32 %v397_v14, %v345_v15  ;;  %v398_v20 = vld [vmem:[#allocation2 + $0xc] sm:$0xf]  ;;  %243 = vmatpush.bf16.msra.mxu3 %v372_v12  ;;  %v352_v21 = vor.u32 %v400_v19, %v351_v18  ;;  %v353_v22 = vld [vmem:[#allocation2 + $0x18] sm:$0xf0]  ;;  %v393_v24 = vld [vmem:[%s579_s0] sm:$0xff]  ;;  %vm122_vm0 = vcmask 261120  }
   0xc   :  { %v356_v23 = vor.u32 %v398_v20, %v353_v22  ;;  %v394_v25 = vld [vmem:[%s579_s0 + $0x8] sm:$0xff]  ;;  %v395_v26 = vld [vmem:[%s579_s0 + $0x10] sm:$0xff]  ;;  %v396_v27 = vld [vmem:[%s579_s0 + $0x18] sm:$0xff]  ;;  %s312_s5 = sshll.u32 %s582_s3, 4  ;;  %s313_s5 = int_to_ptr.hbm [resolvable:$true] %s312_s5 }
   0xd   :  { %145 = vmatpush.bf16.msra.mxu0 %v344_v16  ;;  %v40_v28 = vld [vmem:[%s579_s0 + $0x20] sm:$0xf]  ;;  %s464_s0 = smov [#allocation5]  }
   0xe   :  { %178 = vmatpush.bf16.msra.mxu1 %v348_v17  ;;  %v76_v29 = vunpack.c.l.b16 %v40_v28  ;;  %v49_v31 = vld [vmem:[%s581_s2] sm:$0xf]  ;;  %s310_s2 = sshll.u32 %s464_s0, 4  ;;  %s311_s2 = int_to_ptr.vmem [resolvable:$true] %s310_s2 }
   0xf   :  { %211 = vmatpush.bf16.msra.mxu2 %v352_v21  ;;  %244 = vmatpush.bf16.msra.mxu3 %v356_v23  ;;  %v529_v32 = vperm.slane %v49_v31, 0  ;;  %v531_v33 = vperm.slane %v49_v31, 1  ;;  %v535_v39 = vperm.slane %v49_v31, 2  ;;  %v537_v40 = vperm.slane %v49_v31, 3 }
  0x10   :  { %373 = vmatmul.msk.bf16.vlgmr.msra.gmra.mxu0 %vm122_vm0, %v393_v24  ;;  %v81_v30 = vpack.c.b16 %v76_v29, %v76_v29 }
  0x11   :  { %378 = vmatmul.msk.bf16.vlgmr.msra.gmra.mxu1 %vm122_vm0, %v393_v24 }
  0x12   :  { %383 = vmatmul.msk.bf16.vlgmr.msra.gmra.mxu2 %vm122_vm0, %v393_v24  ;;  %388 = vmatmul.msk.bf16.vlgmr.msra.gmra.mxu3 %vm122_vm0, %v393_v24 }
  0x20   :  { %374 = vmatmul.msk.bf16.gmra.mxu0 %vm122_vm0, %v394_v25 }
  0x21   :  { %379 = vmatmul.msk.bf16.gmra.mxu1 %vm122_vm0, %v394_v25 }
  0x22   :  { %384 = vmatmul.msk.bf16.gmra.mxu2 %vm122_vm0, %v394_v25  ;;  %389 = vmatmul.msk.bf16.gmra.mxu3 %vm122_vm0, %v394_v25 }
  0x30   :  { %375 = vmatmul.msk.bf16.gmra.mxu0 %vm122_vm0, %v395_v26 }
  0x31   :  { %380 = vmatmul.msk.bf16.gmra.mxu1 %vm122_vm0, %v395_v26 }
  0x32   :  { %385 = vmatmul.msk.bf16.gmra.mxu2 %vm122_vm0, %v395_v26  ;;  %390 = vmatmul.msk.bf16.gmra.mxu3 %vm122_vm0, %v395_v26 }
  0x40   :  { %376 = vmatmul.msk.bf16.gmra.mxu0 %vm122_vm0, %v396_v27 }
  0x41   :  { %381 = vmatmul.msk.bf16.gmra.mxu1 %vm122_vm0, %v396_v27 }
  0x42   :  { %386 = vmatmul.msk.bf16.gmra.mxu2 %vm122_vm0, %v396_v27  ;;  %391 = vmatmul.msk.bf16.gmra.mxu3 %vm122_vm0, %v396_v27 }
  0x50   :  { %377 = vmatmul.msk.bf16.gmra.mxu0 %vm122_vm0, %v81_v30 }
  0x51   :  { %382 = vmatmul.msk.bf16.gmra.mxu1 %vm122_vm0, %v81_v30 }
  0x52   :  { %387 = vmatmul.msk.bf16.gmra.mxu2 %vm122_vm0, %v81_v30  ;;  %392 = vmatmul.msk.bf16.gmra.mxu3 %vm122_vm0, %v81_v30 }
  0x8d   :  { %v147_v34 = vpop.f32.mrf.mxu0 }
  0x8e   :  { %v148_v35 = vadd.f32 %v147_v34, %v529_v32  ;;  %v180_v36 = vpop.f32.mrf.mxu1 }
  0x8f   :  { %v181_v37 = vadd.f32 %v180_v36, %v531_v33 }
  0x91   :  { %v270_v38 = vpack.c.bf16 %v181_v37, %v148_v35 }
  0x93   :  { %288 = vst [vmem:[#allocation5] sm:$0xff] %v270_v38 }
  0x95   :  { %v213_v41 = vpop.f32.mrf.mxu2  ;;  %v246_v43 = vpop.f32.mrf.mxu3 }
  0x96   :  { %v214_v42 = vadd.f32 %v213_v41, %v535_v39  ;;  %v149_v44 = vpop.f32.mrf.mxu0  ;;  %v247_v45 = vadd.f32 %v246_v43, %v537_v40  ;;  %v182_v47 = vpop.f32.mrf.mxu1 }
  0x97   :  { %v150_v46 = vadd.f32 %v149_v44, %v529_v32  ;;  %v183_v48 = vadd.f32 %v182_v47, %v531_v33 }
  0x98   :  { %v271_v49 = vpack.c.bf16 %v247_v45, %v214_v42 }
  0x99   :  { %v272_v50 = vpack.c.bf16 %v183_v48, %v150_v46 }
  0x9a   :  { %289 = vst [vmem:[#allocation5 + $0x8] sm:$0xff] %v271_v49 }
  0x9b   :  { %290 = vst [vmem:[#allocation5 + $0x10] sm:$0xff] %v272_v50 }
  0x9d   :  { %v215_v51 = vpop.f32.mrf.mxu2  ;;  %v248_v53 = vpop.f32.mrf.mxu3 }
  0x9e   :  { %v216_v52 = vadd.f32 %v215_v51, %v535_v39  ;;  %v152_v54 = vpop.f32.mrf.mxu0  ;;  %v249_v55 = vadd.f32 %v248_v53, %v537_v40  ;;  %v185_v57 = vpop.f32.mrf.mxu1 }
  0x9f   :  { %v153_v56 = vadd.f32 %v152_v54, %v529_v32  ;;  %v186_v58 = vadd.f32 %v185_v57, %v531_v33 }
  0xa0   :  { %v273_v59 = vpack.c.bf16 %v249_v55, %v216_v52 }
  0xa1   :  { %v274_v60 = vpack.c.bf16 %v186_v58, %v153_v56 }
  0xa2   :  { %291 = vst [vmem:[#allocation5 + $0x18] sm:$0xff] %v273_v59 }
  0xa3   :  { %292 = vst [vmem:[#allocation5 + $0x20] sm:$0xff] %v274_v60 }
  0xa5   :  { %v218_v61 = vpop.f32.mrf.mxu2  ;;  %v251_v63 = vpop.f32.mrf.mxu3 }
  0xa6   :  { %v219_v62 = vadd.f32 %v218_v61, %v535_v39  ;;  %v154_v0 = vpop.f32.mrf.mxu0  ;;  %v252_v1 = vadd.f32 %v251_v63, %v537_v40  ;;  %v187_v3 = vpop.f32.mrf.mxu1 }
  0xa7   :  { %v155_v2 = vadd.f32 %v154_v0, %v529_v32  ;;  %v188_v4 = vadd.f32 %v187_v3, %v531_v33 }
  0xa8   :  { %v275_v5 = vpack.c.bf16 %v252_v1, %v219_v62 }
  0xa9   :  { %v276_v6 = vpack.c.bf16 %v188_v4, %v155_v2 }
  0xaa   :  { %293 = vst [vmem:[#allocation5 + $0x28] sm:$0xff] %v275_v5 }
  0xab   :  { %294 = vst [vmem:[#allocation5 + $0x30] sm:$0xff] %v276_v6 }
  0xad   :  { %v220_v7 = vpop.f32.mrf.mxu2  ;;  %v253_v9 = vpop.f32.mrf.mxu3 }
  0xae   :  { %v221_v8 = vadd.f32 %v220_v7, %v535_v39  ;;  %v157_v10 = vpop.f32.mrf.mxu0  ;;  %v254_v11 = vadd.f32 %v253_v9, %v537_v40  ;;  %v190_v13 = vpop.f32.mrf.mxu1 }
  0xaf   :  { %v158_v12 = vadd.f32 %v157_v10, %v529_v32  ;;  %v191_v14 = vadd.f32 %v190_v13, %v531_v33 }
  0xb0   :  { %v277_v15 = vpack.c.bf16 %v254_v11, %v221_v8 }
  0xb1   :  { %v278_v16 = vpack.c.bf16 %v191_v14, %v158_v12 }
  0xb2   :  { %295 = vst [vmem:[#allocation5 + $0x38] sm:$0xff] %v277_v15 }
  0xb3   :  { %296 = vst [vmem:[#allocation5 + $0x40] sm:$0xff] %v278_v16 }
  0xb5   :  { %v223_v17 = vpop.f32.mrf.mxu2  ;;  %v256_v19 = vpop.f32.mrf.mxu3 }
  0xb6   :  { %v224_v18 = vadd.f32 %v223_v17, %v535_v39  ;;  %v159_v20 = vpop.f32.mrf.mxu0  ;;  %v257_v21 = vadd.f32 %v256_v19, %v537_v40  ;;  %v192_v23 = vpop.f32.mrf.mxu1 }
  0xb7   :  { %v160_v22 = vadd.f32 %v159_v20, %v529_v32  ;;  %v193_v24 = vadd.f32 %v192_v23, %v531_v33 }
  0xb8   :  { %v279_v25 = vpack.c.bf16 %v257_v21, %v224_v18 }
  0xb9   :  { %v280_v26 = vpack.c.bf16 %v193_v24, %v160_v22 }
  0xba   :  { %297 = vst [vmem:[#allocation5 + $0x48] sm:$0xff] %v279_v25 }
  0xbb   :  { %298 = vst [vmem:[#allocation5 + $0x50] sm:$0xff] %v280_v26 }
  0xbd   :  { %v225_v27 = vpop.f32.mrf.mxu2  ;;  %v258_v29 = vpop.f32.mrf.mxu3 }
  0xbe   :  { %v226_v28 = vadd.f32 %v225_v27, %v535_v39  ;;  %v162_v30 = vpop.f32.mrf.mxu0  ;;  %v259_v31 = vadd.f32 %v258_v29, %v537_v40  ;;  %v195_v35 = vpop.f32.mrf.mxu1 }
  0xbf   :  { %v163_v34 = vadd.f32 %v162_v30, %v529_v32  ;;  %v196_v36 = vadd.f32 %v195_v35, %v531_v33 }
  0xc0   :  { %v281_v37 = vpack.c.bf16 %v259_v31, %v226_v28 }
  0xc1   :  { %v282_v38 = vpack.c.bf16 %v196_v36, %v163_v34 }
  0xc2   :  { %299 = vst [vmem:[#allocation5 + $0x58] sm:$0xff] %v281_v37 }
  0xc3   :  { %300 = vst [vmem:[#allocation5 + $0x60] sm:$0xff] %v282_v38 }
  0xc5   :  { %v228_v41 = vpop.f32.mrf.mxu2  ;;  %v261_v43 = vpop.f32.mrf.mxu3 }
  0xc6   :  { %v229_v42 = vadd.f32 %v228_v41, %v535_v39  ;;  %v164_v44 = vpop.f32.mrf.mxu0  ;;  %v262_v45 = vadd.f32 %v261_v43, %v537_v40  ;;  %v197_v47 = vpop.f32.mrf.mxu1 }
  0xc7   :  { %v165_v46 = vadd.f32 %v164_v44, %v529_v32  ;;  %v198_v48 = vadd.f32 %v197_v47, %v531_v33 }
  0xc8   :  { %v283_v49 = vpack.c.bf16 %v262_v45, %v229_v42 }
  0xc9   :  { %v284_v50 = vpack.c.bf16 %v198_v48, %v165_v46 }
  0xca   :  { %301 = vst [vmem:[#allocation5 + $0x68] sm:$0xff] %v283_v49 }
  0xcb   :  { %302 = vst [vmem:[#allocation5 + $0x70] sm:$0xff] %v284_v50 }
  0xcd   :  { %v230_v51 = vpop.f32.mrf.mxu2  ;;  %v263_v53 = vpop.f32.mrf.mxu3 }
  0xce   :  { %v231_v52 = vadd.f32 %v230_v51, %v535_v39  ;;  %v167_v54 = vpop.f32.mrf.mxu0  ;;  %v264_v55 = vadd.f32 %v263_v53, %v537_v40  ;;  %v200_v57 = vpop.f32.mrf.mxu1 }
  0xcf   :  { %v168_v56 = vadd.f32 %v167_v54, %v529_v32  ;;  %v201_v58 = vadd.f32 %v200_v57, %v531_v33 }
  0xd0   :  { %v285_v59 = vpack.c.bf16 %v264_v55, %v231_v52 }
  0xd1   :  { %v286_v60 = vpack.c.bf16 %v201_v58, %v168_v56 }
  0xd2   :  { %303 = vst [vmem:[#allocation5 + $0x78] sm:$0xff] %v285_v59 }
  0xd3   :  { %304 = vst [vmem:[#allocation5 + $0x80] sm:$0xff] %v286_v60 }
  0xd5   :  { %v233_v61 = vpop.f32.mrf.mxu2  ;;  %v266_v63 = vpop.f32.mrf.mxu3 }
  0xd6   :  { %v234_v62 = vadd.f32 %v233_v61, %v535_v39  ;;  %v169_v0 = vpop.f32.mrf.mxu0  ;;  %v267_v32 = vadd.f32 %v266_v63, %v537_v40  ;;  %v202_v1 = vpop.f32.mrf.mxu1 }
  0xd8   :  { %v287_v2 = vpack.c.bf16 %v267_v32, %v234_v62 }
  0xda   :  { %305 = vst [vmem:[#allocation5 + $0x88] sm:$0xff] %v287_v2 }
  0xdb   :  { %318 = dma.vmem_to_hbm [thread:$0]  %s311_s2, 2304, %s313_s5, [#allocation4], %s462_s17, %s462_s17, %s463_s18  }
  0xdd   :  { %v235_v33 = vpop.f32.mrf.mxu2  ;;  %v268_v39 = vpop.f32.mrf.mxu3 }
  0xde   :  { %459 = dma.done.wait [#allocation4], 2304  }
  0xdf   :  { %460 = vsyncadd [#allocation4], 4294964992 }
  0xe0   :  { %323 = vsyncpa [#allocation3], 1 }
  0xe1   :  { %324 = vsyncpa [#allocation4], 1 }

</bundles_post_ra>
